<compile_context>
chip_gen: v5e
topology: v5e:2x2
jax: 0.10.0
libtpu: 0.0.40
codegen_flags: <defaults>
</compile_context>

<pallas_src>
import functools

import jax
import jax.numpy as jnp
from jax.experimental import pallas as pl
from jax.experimental.pallas import tpu as pltpu


def channel_mean_kernel(x_ref, o_ref, *, inv_c):
    # x_ref: (TB, C, TL) VMEM tile ; o_ref: (TB, TL) dense tile.
    x = x_ref[...]
    if x.dtype != jnp.float32:
        x = x.astype(jnp.float32)                 # accumulate in f32
    s = jnp.sum(x, axis=1)                        # sublane reduce over C -> (TB, TL)
    o_ref[...] = (s * inv_c).astype(o_ref.dtype)  # mul by 1/C, no divide


def _round_up(x, m):
    return ((x + m - 1) // m) * m


def _divisors_desc(m):
    return [d for d in range(m, 0, -1) if m % d == 0]


def _tpu_vmem_and_cores():
    """(vmem_capacity_bytes, tensorcores_per_chip) with safe fallbacks."""
    vmem = 64 * 1024 * 1024        # conservative (v7x-sized) if query fails
    cores = 1                      # no 2-TC split if we cannot identify the chip
    try:
        info = pltpu.get_tpu_info()
    except Exception:
        return vmem, cores
    v = getattr(info, "vmem_capacity_bytes", None)
    if isinstance(v, int) and v > 0:
        vmem = v
    cores = None
    for attr in ("tensorcores_per_chip", "num_tensorcores", "num_cores", "core_count"):
        a = getattr(info, attr, None)
        if isinstance(a, int) and a > 0:
            cores = a
            break
    if cores is None:
        # Heuristic: 64 MiB VMEM parts (v7x) have 2 TensorCores per chip.
        cores = 2 if vmem <= 64 * 1024 * 1024 else 1
    return vmem, cores


def p_model_forward(x):
    """x: (N, C, W, H) -> (N, 1, W, H), mean over C (== the PyTorch module)."""
    n, c, w, h = x.shape
    l = w * h
    xf = x.reshape(n, c, l)                       # lane-dense layout (N, C, W*H)
    itemsize = jnp.dtype(x.dtype).itemsize
    q = max(1, 32 // itemsize)                    # sublane quantum

    vmem_capacity, num_tc = _tpu_vmem_and_cores()
    if vmem_capacity >= 128 * 1024 * 1024:        # v5e / v6e (128 MiB VMEM)
        budget = 64 * 1024 * 1024
        vmem_limit = 100 * 1024 * 1024
    else:                                         # v7x (64 MiB VMEM)
        budget = 32 * 1024 * 1024
        vmem_limit = 44 * 1024 * 1024

    c_pad = _round_up(c, q)

    def block_bytes(tb, tl):
        # Double-buffered in + out with sublane padding accounted for.
        return 2 * (tb * c_pad + _round_up(tb, q)) * tl * itemsize

    # Legal batch tiles: the full batch, or multiples of the sublane quantum
    # (keeps the dense 2-D output block sublane-aligned).
    tb_cands = [d for d in _divisors_desc(n) if d == n or d % q == 0]
    tb_min = min(tb_cands)

    # --- Phase 1: prefer the full spatial extent (one contiguous DMA slab) ---
    l_pad, tl = l, l
    tb = next((t for t in tb_cands if block_bytes(t, l) <= budget), None)

    # --- Phase 2: full-L block too big even at the smallest batch tile -------
    if tb is None:
        l_pad = _round_up(l, 128)                 # pad L so we can tile legally
        tl = None
        for d in range(l_pad, 127, -128):         # 128-multiples, descending
            if l_pad % d == 0 and block_bytes(tb_min, d) <= budget:
                tl = d
                break
        if tl is None:
            tl = 128                              # pathological C; accept
        tb = next((t for t in tb_cands if block_bytes(t, tl) <= budget), tb_min)

    # --- Only on 2-TC chips (v7x): ensure >=2 parallel steps on big shapes ---
    if (num_tc >= 2
            and (n // tb) * (l_pad // tl) < 2
            and n * c * l * itemsize > (1 << 20)):
        smaller_tb = [t for t in tb_cands if t < tb]
        if smaller_tb:
            tb = smaller_tb[0]                    # split batch: rows stay contiguous
        elif tl % 256 == 0:
            tl //= 2

    if l_pad != l:
        xf = jnp.pad(xf, ((0, 0), (0, 0), (0, l_pad - l)))

    grid = (n // tb, l_pad // tl)
    kernel = functools.partial(channel_mean_kernel, inv_c=1.0 / c)

    out_flat = pl.pallas_call(
        kernel,
        out_shape=jax.ShapeDtypeStruct((n, l_pad), x.dtype),
        grid_spec=pl.GridSpec(
            grid=grid,
            in_specs=[pl.BlockSpec((tb, c, tl), lambda i, j: (i, 0, j))],
            out_specs=pl.BlockSpec((tb, tl), lambda i, j: (i, j)),
        ),
        compiler_params=pltpu.CompilerParams(
            dimension_semantics=("parallel", "parallel"),
            vmem_limit_bytes=vmem_limit,
        ),
        cost_estimate=pl.CostEstimate(
            flops=n * c * l,
            transcendentals=0,
            bytes_accessed=(n * c * l + n * l) * itemsize,
        ),
    )(xf)

    if l_pad != l:
        out_flat = out_flat[:, :l]
    return out_flat.reshape(n, 1, w, h)


if __name__ == "__main__":
    key = jax.random.PRNGKey(0)
    N, C, W, H = 2, 4, 16, 16
    x = jax.random.normal(key, (N, C, W, H), dtype=jnp.float32)

    out = p_model_forward(x)
    out = jax.block_until_ready(out)

    # correctness check against plain-JAX reference (same semantics as the
    # PyTorch view/permute/avg_pool1d/view chain)
    ref = jnp.mean(x, axis=1, keepdims=True)
    assert out.shape == (N, 1, W, H)
    assert jnp.allclose(out, ref, atol=1e-6, rtol=1e-6)

    print("KERNEL_OK")
</pallas_src>

<mosaic_0001>
module attributes {stable_mosaic.version = 11 : i64} {
  func.func @channel_mean_kernel(%arg0: i32, %arg1: i32, %arg2: memref<2x4x256xf32, #tpu.memory_space<vmem>>, %arg3: memref<2x256xf32, #tpu.memory_space<vmem>>) attributes {dimension_semantics = [#tpu.dimension_semantics<parallel>, #tpu.dimension_semantics<parallel>], iteration_bounds = array<i64: 1, 1>, scalar_prefetch = 0 : i64, scratch_operands = 0 : i64, tpu.core_type = #tpu.core_type<tc>, window_params = [{transform_indices = @transform_0, window_bounds = array<i64: 2, 4, 256>}, {transform_indices = @transform_1, window_bounds = array<i64: 2, 256>}]} {
    %c0 = arith.constant 0 : index
    %c0_0 = arith.constant 0 : index
    %c0_1 = arith.constant 0 : index
    %0 = vector.load %arg2[%c0, %c0_0, %c0_1] : memref<2x4x256xf32, #tpu.memory_space<vmem>>, vector<2x4x256xf32>
    %cst = arith.constant dense<0.000000e+00> : vector<2x256xf32>
    %1 = vector.multi_reduction <add>, %0, %cst [1] : vector<2x4x256xf32> to vector<2x256xf32>
    %cst_2 = arith.constant 2.500000e-01 : f32
    %2 = vector.broadcast %cst_2 : f32 to vector<2x256xf32>
    %3 = arith.mulf %1, %2 : vector<2x256xf32>
    %c0_3 = arith.constant 0 : index
    %c0_4 = arith.constant 0 : index
    %4 = vector.load %arg3[%c0_3, %c0_4] : memref<2x256xf32, #tpu.memory_space<vmem>>, vector<2x256xf32>
    tpu.vector_store %arg3[%c0_3, %c0_4], %3 {strides = array<i32>} : memref<2x256xf32, #tpu.memory_space<vmem>>, vector<2x256xf32>,
    return
  }
  func.func @transform_0(%arg0: i32, %arg1: i32) -> (i32, i32, i32) {
    %c0_i32 = arith.constant 0 : i32
    %c0_i32_0 = arith.constant 0 : i32
    return %arg0, %c0_i32, %arg1 : i32, i32, i32
  }
  func.func @transform_1(%arg0: i32, %arg1: i32) -> (i32, i32) {
    %c0_i32 = arith.constant 0 : i32
    return %arg0, %arg1 : i32, i32
  }
}

</mosaic_0001>

<bundles_post_ra>
// kernel: tpu_custom_call.1
= control target key start
LH: loop header
LB: loop body
LE: loop exit
PB: predicated region body
PF: predicated region fallthrough
CT: control target
= control target key end

     0   :  { %6 = vsyncpa [#allocation3], 0  ;;  %s190_s0 = inlined_call_operand.hbm [shape: f32[2,4,256], index: 0, kind: input, shape index: {}]   ;;  %s191_s1 = inlined_call_operand.hbm [shape: f32[2,256], index: 1, kind: output, shape index: {}]  }
   0x1   :  { %7 = vsyncpa [#allocation4], 0  ;;  %s12_s8 = sshll.u32 %s190_s0, 4  ;;  %s170_s9 = smov [#allocation2]   ;;  %s13_s8 = int_to_ptr.hbm [resolvable:$true] %s12_s8 }
   0x2   :  { %s14_s10 = sshll.u32 %s170_s9, 4  ;;  %s171_s11 = smov 128   ;;  %s15_s10 = int_to_ptr.vmem [resolvable:$true] %s14_s10 }
   0x3   :  { %s172_s12 = smov 8  }
   0x4   :  { %20 = dma.hbm_to_vmem [thread:$0]  %s13_s8, 256, %s15_s10, [#allocation3], %s171_s11, %s171_s11, %s172_s12  }
   0x5   :  { %166 = dma.done.wait [#allocation3], 256  }
   0x6   :  { %167 = vsyncadd [#allocation3], 4294967040  ;;  %v25_v0 = vld [vmem:[#allocation2] sm:$0xff]  ;;  %v26_v1 = vld [vmem:[#allocation2 + $0x8] sm:$0xff]  ;;  %vm40_vm0 = vcmask 1043456   ;;  %vm79_vm1 = vcmask 1041408  }
   0x7   :  { %29 = vst [vmem:[#allocation1] ss:$2 sm:$0xff] %v25_v0  ;;  %vm87_vm2 = vcmask 1041409   ;;  %vm89_vm3 = vcmask 1043459   ;;  %vm91_vm4 = vcmask 1045509   ;;  %s173_s0 = smov [#allocation5]  }
   0x8   :  { %33 = vst [vmem:[#allocation1 + $0x10] ss:$2 sm:$0xff] %v26_v1  ;;  %s102_s13 = sshll.u32 %s173_s0, 4  ;;  %s104_s16 = sshll.u32 %s191_s1, 4  ;;  %vm93_vm5 = vcmask 1047559   ;;  %s103_s13 = int_to_ptr.vmem [resolvable:$true] %s102_s13  ;;  %s105_s16 = int_to_ptr.hbm [resolvable:$true] %s104_s16 }
   0xe   :  { %v30_v2 = vld.sshfl [vmem:[#allocation1] sm:$0xff pattern:$0x75316420]  ;;  %v31_v3 = vld.sshfl [vmem:[#allocation1 + $0x8] sm:$0xff pattern:$0x75316420] }
   0xf   :  { %v34_v4 = vld.sshfl [vmem:[#allocation1 + $0x10] sm:$0xff pattern:$0x75316420]  ;;  %v35_v5 = vld.sshfl [vmem:[#allocation1 + $0x18] sm:$0xff pattern:$0x75316420] }
  0x10   :  { %v41_v6 = vsel %vm40_vm0, %v30_v2, 0.0  ;;  %v48_v7 = vsel %vm40_vm0, %v31_v3, 0.0  ;;  %v55_v8 = vsel %vm40_vm0, %v34_v4, 0.0  ;;  %v62_v9 = vsel %vm40_vm0, %v35_v5, 0.0 }
  0x11   :  { %v42_v10 = vrot.slane %v41_v6, 4  ;;  %v49_v11 = vrot.slane %v48_v7, 4  ;;  %v56_v12 = vrot.slane %v55_v8, 4  ;;  %v63_v13 = vrot.slane %v62_v9, 4 }
  0x13   :  { %v43_v14 = vadd.f32 %v42_v10, %v41_v6  ;;  %v50_v15 = vadd.f32 %v49_v11, %v48_v7  ;;  %v57_v16 = vadd.f32 %v56_v12, %v55_v8  ;;  %v64_v17 = vadd.f32 %v63_v13, %v62_v9 }
  0x15   :  { %v44_v18 = vrot.slane %v43_v14, 2  ;;  %v51_v19 = vrot.slane %v50_v15, 2  ;;  %v58_v20 = vrot.slane %v57_v16, 2  ;;  %v65_v21 = vrot.slane %v64_v17, 2 }
  0x17   :  { %v45_v22 = vadd.f32 %v44_v18, %v43_v14  ;;  %v52_v23 = vadd.f32 %v51_v19, %v50_v15  ;;  %v59_v24 = vadd.f32 %v58_v20, %v57_v16  ;;  %v66_v25 = vadd.f32 %v65_v21, %v64_v17 }
  0x19   :  { %v46_v26 = vrot.slane %v45_v22, 1  ;;  %v53_v27 = vrot.slane %v52_v23, 1  ;;  %v60_v28 = vrot.slane %v59_v24, 1  ;;  %v67_v29 = vrot.slane %v66_v25, 1 }
  0x1b   :  { %v54_v30 = vadd.f32 %v53_v27, %v52_v23  ;;  %v61_v31 = vadd.f32 %v60_v28, %v59_v24  ;;  %v68_v32 = vadd.f32 %v67_v29, %v66_v25  ;;  %v47_v33 = vadd.f32 %v46_v26, %v45_v22 }
  0x1d   :  { %v70_v34 = vmul.f32 0.25, %v54_v30  ;;  %v72_v35 = vmul.f32 0.25, %v68_v32  ;;  %v71_v36 = vmul.f32 0.25, %v61_v31  ;;  %v69_v39 = vmul.f32 0.25, %v47_v33 }
  0x1f   :  { %v77_v37 = vrot.slane %v70_v34, 6  ;;  %v78_v38 = vrot.slane %v72_v35, 6 }
  0x21   :  { %v81_v40 = vsel %vm79_vm1, %v71_v36, %v78_v38  ;;  %v80_v42 = vsel %vm79_vm1, %v69_v39, %v77_v37 }
  0x22   :  { %v86_v41 = vrot.slane %v81_v40, 7 }
  0x24   :  { %v88_v43 = vsel %vm87_vm2, %v86_v41, %v80_v42 }
  0x25   :  { %v90_v44 = vsel %vm89_vm3, %v86_v41, %v88_v43 }
  0x26   :  { %v92_v45 = vsel %vm91_vm4, %v86_v41, %v90_v44 }
  0x27   :  { %v94_v46 = vsel %vm93_vm5, %v86_v41, %v92_v45 }
  0x28   :  { %96 = vst [vmem:[#allocation5] sm:$0xf] %v94_v46 }
  0x29   :  { %107 = dma.vmem_to_hbm [thread:$0]  %s103_s13, 64, %s105_s16, [#allocation4]  }
  0x2a   :  { %168 = dma.done.wait [#allocation4], 64  }
  0x2b   :  { %169 = vsyncadd [#allocation4], 4294967232 }
  0x2c   :  { %112 = vsyncpa [#allocation3], 1 }
  0x2d   :  { %113 = vsyncpa [#allocation4], 1 }

</bundles_post_ra>
